<compile_context>
chip_gen: v7x
topology: tpu7x:2x2x1
jax: 0.10.0
libtpu: 0.0.40
codegen_flags: <defaults>
</compile_context>

<pallas_src>
import math

import jax
import jax.numpy as jnp
from jax.experimental import pallas as pl
from jax.experimental.pallas import tpu as pltpu


def _wmse_partial_kernel(x_ref, t_ref, o_ref):
    # Zero the resident per-partition accumulator at the start of the reduction axis.
    @pl.when(pl.program_id(1) == 0)
    def _():
        o_ref[...] = jnp.zeros_like(o_ref)

    d = x_ref[...].astype(jnp.float32) - t_ref[...].astype(jnp.float32)
    dd = d * d
    # Fold the tile rows into groups of 8 sublanes and accumulate with plain
    # vreg adds; the final 8 -> 1 cross-sublane reduce is done in the wrapper.
    o_ref[0] += jnp.sum(dd.reshape(-1, 8, dd.shape[-1]), axis=0)


def _reference(inputs, targets, weight=None):
    mse = (inputs.astype(jnp.float32) - targets.astype(jnp.float32)) ** 2
    if weight is not None:
        w = weight.astype(jnp.float32)
        w = w / jnp.sum(w)
        return jnp.sum(jnp.mean(mse, axis=0) * w)
    return jnp.mean(mse)


# Per-input tile byte budget: 2 inputs x 2 pipeline buffers x 4 MiB = 16 MiB
# of double-buffered input VMEM, comfortably inside the 48 MiB scoped limit
# (v7x has 64 MiB physical VMEM; v5e/v6e have 128 MiB).
_TILE_BYTES = 4 * 1024 * 1024
_VMEM_LIMIT = 48 * 1024 * 1024
_FAST_PATH_BYTES = 1 << 20


def weighted_mse(inputs, targets, weight=None, *, force_pallas=False):
    """Pallas implementation of WeightedMSE.forward.

    inputs, targets: (N, C) arrays (float32 or bfloat16).
    weight: optional (C,) array (un-normalized, as passed to the module __init__).
    Returns a float32 scalar.
    """
    assert inputs.shape == targets.shape and inputs.ndim == 2
    N, C = inputs.shape
    itemsize = jnp.dtype(inputs.dtype).itemsize

    # Tiny problems: XLA fusion beats kernel launch + pipeline warm-up.
    if not force_pallas and N * C * itemsize <= _FAST_PATH_BYTES:
        return _reference(inputs, targets, weight)

    # ---- lane-dense folding: (N, C) -> (Nw, g*C) with g*C a multiple of 128 ----
    g = 1 if C % 128 == 0 else 128 // math.gcd(C, 128)
    Cw = g * C

    x, t = inputs, targets
    Ng = ((N + g - 1) // g) * g
    if Ng != N:  # zero rows contribute 0 to the sum of squares
        x = jnp.pad(x, ((0, Ng - N), (0, 0)))
        t = jnp.pad(t, ((0, Ng - N), (0, 0)))
    Nw = Ng // g
    if g != 1:
        x = x.reshape(Nw, Cw)
        t = t.reshape(Nw, Cw)

    # ---- batch tile: dtype-aligned rows, ~4 MiB per input block ----
    sub = {4: 8, 2: 16, 1: 32}.get(itemsize, 8)
    tn = min(Nw, max(sub, _TILE_BYTES // (Cw * itemsize)))
    tn -= tn % sub
    tn = max(tn, sub)

    num_tiles = -(-Nw // tn)
    P = 2 if num_tiles >= 2 else 1           # both TensorCores on v7x
    num_tiles = ((num_tiles + P - 1) // P) * P
    Nw_pad = num_tiles * tn
    if Nw_pad != Nw:                          # zero-pad to a whole number of tiles
        x = jnp.pad(x, ((0, Nw_pad - Nw), (0, 0)))
        t = jnp.pad(t, ((0, Nw_pad - Nw), (0, 0)))
    K = num_tiles // P

    partials = pl.pallas_call(
        _wmse_partial_kernel,
        out_shape=jax.ShapeDtypeStruct((P, 8, Cw), jnp.float32),
        grid_spec=pltpu.PrefetchScalarGridSpec(
            num_scalar_prefetch=0,
            grid=(P, K),
            in_specs=[
                pl.BlockSpec((tn, Cw), lambda p, k, K=K: (p * K + k, 0)),  # inputs
                pl.BlockSpec((tn, Cw), lambda p, k, K=K: (p * K + k, 0)),  # targets
            ],
            out_specs=pl.BlockSpec((1, 8, Cw), lambda p, k: (p, 0, 0)),
        ),
        compiler_params=pltpu.CompilerParams(
            dimension_semantics=("parallel", "arbitrary"),
            vmem_limit_bytes=_VMEM_LIMIT,
        ),
    )(x, t)

    # Combine partitions + sublanes -> (Cw,), then un-fold lanes -> (C,).
    per_feature = jnp.sum(partials, axis=(0, 1))
    if g != 1:
        per_feature = jnp.sum(per_feature.reshape(g, C), axis=0)

    if weight is not None:
        w = weight.astype(jnp.float32)
        w = w / jnp.sum(w)                     # normalization from __init__
        return jnp.dot(per_feature, w) / jnp.float32(N)
    return jnp.sum(per_feature) / jnp.float32(N * C)


if __name__ == "__main__":
    key = jax.random.PRNGKey(0)
    k1, k2, k3 = jax.random.split(key, 3)

    # Small shapes consistent with the module: batch=64, features=32.
    N, C = 64, 32
    inputs = jax.random.normal(k1, (N, C), dtype=jnp.float32)
    targets = jax.random.normal(k2, (N, C), dtype=jnp.float32)
    weight = jax.random.uniform(k3, (C,), dtype=jnp.float32) + 0.1

    # Weighted path (lane folding g=4 -> Cw=128).
    out_w = weighted_mse(inputs, targets, weight, force_pallas=True)
    jax.block_until_ready(out_w)
    ref_w = _reference(inputs, targets, weight)
    assert jnp.allclose(out_w, ref_w, rtol=1e-5, atol=1e-6), (out_w, ref_w)

    # Unweighted path.
    out_u = weighted_mse(inputs, targets, None, force_pallas=True)
    jax.block_until_ready(out_u)
    ref_u = _reference(inputs, targets, None)
    assert jnp.allclose(out_u, ref_u, rtol=1e-5, atol=1e-6), (out_u, ref_u)

    # Awkward shapes: exercises zero-padding, lane folding and the P=2 split.
    N2, C2 = 300, 100
    x2 = jax.random.normal(k1, (N2, C2), dtype=jnp.float32)
    t2 = jax.random.normal(k2, (N2, C2), dtype=jnp.float32)
    w2 = jax.random.uniform(k3, (C2,), dtype=jnp.float32) + 0.1
    out2 = weighted_mse(x2, t2, w2, force_pallas=True)
    jax.block_until_ready(out2)
    ref2 = _reference(x2, t2, w2)
    assert jnp.allclose(out2, ref2, rtol=1e-5, atol=1e-5), (out2, ref2)

    # bfloat16 inputs (16-row sublane alignment; upcast to f32 inside the kernel).
    N3, C3 = 200, 48
    x3 = jax.random.normal(k1, (N3, C3), dtype=jnp.bfloat16)
    t3 = jax.random.normal(k2, (N3, C3), dtype=jnp.bfloat16)
    out3 = weighted_mse(x3, t3, None, force_pallas=True)
    jax.block_until_ready(out3)
    ref3 = _reference(x3, t3, None)
    assert jnp.allclose(out3, ref3, rtol=1e-4, atol=1e-5), (out3, ref3)

    print("KERNEL_OK")
</pallas_src>

<mosaic_0001>
module attributes {stable_mosaic.version = 11 : i64} {
  func.func @_wmse_partial_kernel(%arg0: i32, %arg1: i32, %arg2: memref<16x128xf32, #tpu.memory_space<vmem>>, %arg3: memref<16x128xf32, #tpu.memory_space<vmem>>, %arg4: memref<1x8x128xf32, #tpu.memory_space<vmem>>) attributes {dimension_semantics = [#tpu.dimension_semantics<parallel>, #tpu.dimension_semantics<arbitrary>], iteration_bounds = array<i64: 1, 1>, scalar_prefetch = 0 : i64, scratch_operands = 0 : i64, tpu.core_type = #tpu.core_type<tc>, window_params = [{transform_indices = @transform_0, window_bounds = array<i64: 16, 128>}, {transform_indices = @transform_1, window_bounds = array<i64: 16, 128>}, {transform_indices = @transform_2, window_bounds = array<i64: 1, 8, 128>}]} {
    %c0_i32 = arith.constant 0 : i32
    %0 = arith.cmpi eq, %arg1, %c0_i32 : i32
    %1 = arith.extui %0 : i1 to i32
    %c0_i32_0 = arith.constant 0 : i32
    %2 = arith.cmpi ne, %1, %c0_i32_0 : i32
    scf.if %2 {
      %cst_10 = arith.constant 0.000000e+00 : f32
      %15 = vector.broadcast %cst_10 : f32 to vector<1x8x128xf32>
      %c0_11 = arith.constant 0 : index
      %c0_12 = arith.constant 0 : index
      %c0_13 = arith.constant 0 : index
      %16 = vector.load %arg4[%c0_11, %c0_12, %c0_13] : memref<1x8x128xf32, #tpu.memory_space<vmem>>, vector<1x8x128xf32>
      tpu.vector_store %arg4[%c0_11, %c0_12, %c0_13], %15 {strides = array<i32>} : memref<1x8x128xf32, #tpu.memory_space<vmem>>, vector<1x8x128xf32>,
    } else {
    }
    %c0 = arith.constant 0 : index
    %c0_1 = arith.constant 0 : index
    %3 = vector.load %arg2[%c0, %c0_1] : memref<16x128xf32, #tpu.memory_space<vmem>>, vector<16x128xf32>
    %c0_2 = arith.constant 0 : index
    %c0_3 = arith.constant 0 : index
    %4 = vector.load %arg3[%c0_2, %c0_3] : memref<16x128xf32, #tpu.memory_space<vmem>>, vector<16x128xf32>
    %5 = arith.subf %3, %4 : vector<16x128xf32>
    %6 = arith.mulf %5, %5 : vector<16x128xf32>
    %c0_4 = arith.constant 0 : index
    %c0_5 = arith.constant 0 : index
    %c0_6 = arith.constant 0 : index
    %7 = vector.load %arg4[%c0_4, %c0_5, %c0_6] : memref<1x8x128xf32, #tpu.memory_space<vmem>>, vector<1x8x128xf32>
    %8 = vector.shape_cast %7 : vector<1x8x128xf32> to vector<8x128xf32>
    %9 = vector.shape_cast %6 : vector<16x128xf32> to vector<2x8x128xf32>
    %cst = arith.constant dense<0.000000e+00> : vector<8x128xf32>
    %10 = vector.multi_reduction <add>, %9, %cst [0] : vector<2x8x128xf32> to vector<8x128xf32>
    %11 = arith.addf %8, %10 : vector<8x128xf32>
    %c0_7 = arith.constant 0 : index
    %c0_8 = arith.constant 0 : index
    %c0_9 = arith.constant 0 : index
    %12 = vector.load %arg4[%c0_7, %c0_8, %c0_9] : memref<1x8x128xf32, #tpu.memory_space<vmem>>, vector<1x8x128xf32>
    %13 = vector.shape_cast %12 : vector<1x8x128xf32> to vector<8x128xf32>
    %14 = vector.shape_cast %11 : vector<8x128xf32> to vector<1x8x128xf32>
    tpu.vector_store %arg4[%c0_7, %c0_8, %c0_9], %14 {strides = array<i32>} : memref<1x8x128xf32, #tpu.memory_space<vmem>>, vector<1x8x128xf32>,
    return
  }
  func.func @transform_0(%arg0: i32, %arg1: i32) -> (i32, i32) {
    %c1_i32 = arith.constant 1 : i32
    %0 = arith.muli %arg0, %c1_i32 : i32
    %1 = arith.addi %0, %arg1 : i32
    %c0_i32 = arith.constant 0 : i32
    %c0_i32_0 = arith.constant 0 : i32
    return %1, %c0_i32 : i32, i32
  }
  func.func @transform_1(%arg0: i32, %arg1: i32) -> (i32, i32) {
    %c1_i32 = arith.constant 1 : i32
    %0 = arith.muli %arg0, %c1_i32 : i32
    %1 = arith.addi %0, %arg1 : i32
    %c0_i32 = arith.constant 0 : i32
    %c0_i32_0 = arith.constant 0 : i32
    return %1, %c0_i32 : i32, i32
  }
  func.func @transform_2(%arg0: i32, %arg1: i32) -> (i32, i32, i32) {
    %c0_i32 = arith.constant 0 : i32
    %c0_i32_0 = arith.constant 0 : i32
    %c0_i32_1 = arith.constant 0 : i32
    return %arg0, %c0_i32, %c0_i32_0 : i32, i32, i32
  }
}

</mosaic_0001>

<bundles_post_ra>
// kernel: tpu_custom_call.1
= control target key start
LH: loop header
LB: loop body
LE: loop exit
PB: predicated region body
PF: predicated region fallthrough
CT: control target
= control target key end

     0   :  { %7 = vsyncpa [#allocation3], 0  ;;  %s219_s0 = inlined_call_operand.hbm [shape: f32[16,128], index: 0, kind: input, shape index: {}]   ;;  %s220_s1 = inlined_call_operand.hbm [shape: f32[16,128], index: 1, kind: input, shape index: {}]   ;;  %s221_s2 = inlined_call_operand.hbm [shape: f32[1,8,128], index: 2, kind: output, shape index: {}]  }
   0x1   :  { %8 = vsyncpa [#allocation6], 0 }
   0x2   :  { %9 = vsyncpa [#allocation4], 0  ;;  %s163_s9 = smov [#allocation2]   ;;  %s91_s13 = scalar_lea.hbm %s219_s0, 256 }
   0x3   :  { %s19_s10 = sshll.u32 %s163_s9, 4  ;;  %p92_p0 = scmp.ne.s32.totalorder %s219_s0, %s91_s13  ;;  %s20_s10 = int_to_ptr.vmem [resolvable:$true] %s19_s10 }
   0x4   :  { %p95_p1 = scmp.lt.u32.totalorder %s91_s13, %s219_s0 }
   0x6   :  { %p97_p2 = pnand %p95_p1, %p92_p0 }
   0x8   :  { %100 = shalt.err (!%p97_p2)
}
   0x9   :  { %s101_s18 = scalar_lea.vmem %s20_s10, 256  ;;  %p106_p4 = scmp.lt.s32.totalorder %s20_s10, %s20_s10 }
   0xa   :  { %p102_p3 = scmp.ne.s32.totalorder %s20_s10, %s101_s18  ;;  %p107_p5 = scmp.lt.s32.totalorder %s101_s18, %s101_s18 }
   0xc   :  { %p108_p6 = por %p107_p5, %p106_p4 }
   0xe   :  { %p109_p7 = pnand %p108_p6, %p102_p3 }
  0x10   :  { %112 = shalt.err (!%p109_p7)
}
  0x11   :  { %s164_s19 = smov 128   ;;  %s165_s20 = smov 8  }
  0x12   :  { %25 = dma.hbm_to_vmem [thread:$0]  %s219_s0, 256, %s20_s10, [#allocation3], %s164_s19, %s164_s19, %s165_s20  }
  0x13   :  { %s166_s23 = smov [#allocation5]   ;;  %s113_s27 = scalar_lea.hbm %s220_s1, 256 }
  0x14   :  { %s35_s24 = sshll.u32 %s166_s23, 4  ;;  %p114_p8 = scmp.ne.s32.totalorder %s220_s1, %s113_s27  ;;  %s36_s24 = int_to_ptr.vmem [resolvable:$true] %s35_s24 }
  0x15   :  { %p117_p9 = scmp.lt.u32.totalorder %s113_s27, %s220_s1 }
  0x17   :  { %p119_p10 = pnand %p117_p9, %p114_p8 }
  0x19   :  { %122 = shalt.err (!%p119_p10)
}
  0x1a   :  { %s123_s4 = scalar_lea.vmem %s36_s24, 256  ;;  %p128_p12 = scmp.lt.s32.totalorder %s36_s24, %s36_s24 }
  0x1b   :  { %p124_p11 = scmp.ne.s32.totalorder %s36_s24, %s123_s4  ;;  %p129_p13 = scmp.lt.s32.totalorder %s123_s4, %s123_s4 }
  0x1d   :  { %p130_p0 = por %p129_p13, %p128_p12 }
  0x1f   :  { %p131_p1 = pnand %p130_p0, %p124_p11 }
  0x21   :  { %134 = shalt.err (!%p131_p1)
}
  0x22   :  { %41 = dma.hbm_to_vmem [thread:$0]  %s220_s1, 256, %s36_s24, [#allocation6], %s164_s19, %s164_s19, %s165_s20  }
  0x23   :  { %157 = dma.done.wait [#allocation3], 256  }
  0x24   :  { %158 = vsyncadd [#allocation3], 4294967040 }
  0x25   :  { %159 = dma.done.wait [#allocation6], 256  }
  0x26   :  { %160 = vsyncadd [#allocation6], 4294967040  ;;  %v57_v0 = vld [vmem:[#allocation2] sm:$0xff]  ;;  %v58_v1 = vld [vmem:[#allocation2 + $0x8] sm:$0xff]  ;;  %s167_s6 = smov [#allocation7]  }
  0x27   :  { %v59_v2 = vld [vmem:[#allocation5] sm:$0xff]  ;;  %v60_v3 = vld [vmem:[#allocation5 + $0x8] sm:$0xff]  ;;  %s75_s7 = sshll.u32 %s167_s6, 4  ;;  %s76_s7 = int_to_ptr.vmem [resolvable:$true] %s75_s7 }
  0x28   :  { %v61_v4 = vsub.f32 %v57_v0, %v59_v2  ;;  %v62_v5 = vsub.f32 %v58_v1, %v60_v3  ;;  %s135_s8 = scalar_lea.vmem %s76_s7, 128  ;;  %p140_p3 = scmp.lt.s32.totalorder %s76_s7, %s76_s7 }
  0x29   :  { %p136_p2 = scmp.ne.s32.totalorder %s76_s7, %s135_s8  ;;  %p141_p4 = scmp.lt.s32.totalorder %s135_s8, %s135_s8 }
  0x2a   :  { %v63_v6 = vmul.f32 %v61_v4, %v61_v4  ;;  %v64_v7 = vmul.f32 %v62_v5, %v62_v5 }
  0x2b   :  { %p142_p5 = por %p141_p4, %p140_p3 }
  0x2c   :  { %v66_v8 = vadd.f32 %v64_v7, %v63_v6 }
  0x2d   :  { %p143_p6 = pnand %p142_p5, %p136_p2 }
  0x2e   :  { %68 = vst [vmem:[#allocation7] sm:$0xff] %v66_v8 }
  0x2f   :  { %146 = shalt.err (!%p143_p6)
}
  0x30   :  { %s147_s10 = scalar_lea.hbm %s221_s2, 128 }
  0x31   :  { %p148_p7 = scmp.ne.s32.totalorder %s221_s2, %s147_s10  ;;  %p151_p8 = scmp.lt.u32.totalorder %s147_s10, %s221_s2 }
  0x33   :  { %p153_p9 = pnand %p151_p8, %p148_p7 }
  0x35   :  { %156 = shalt.err (!%p153_p9)
}
  0x36   :  { %78 = dma.vmem_to_hbm [thread:$0]  %s76_s7, 128, %s221_s2, [#allocation4]  }
  0x37   :  { %161 = dma.done.wait [#allocation4], 128  }
  0x38   :  { %162 = vsyncadd [#allocation4], 4294967168 }
  0x39   :  { %82 = vsyncpa [#allocation3], 1 }
  0x3a   :  { %83 = vsyncpa [#allocation6], 1 }
  0x3b   :  { %84 = vsyncpa [#allocation4], 1 }

</bundles_post_ra>
